<compile_context>
chip_gen: v7x
topology: tpu7x:2x2x1
jax: 0.10.0
libtpu: 0.0.40
codegen_flags: <defaults>
</compile_context>

<pallas_src>
import functools
import math

import jax
import jax.numpy as jnp
from jax.experimental import pallas as pl
from jax.experimental.pallas import tpu as pltpu

_SQRT_2_OVER_PI = math.sqrt(2.0 / math.pi)
_INV_SQRT_2 = 1.0 / math.sqrt(2.0)


def _round_up(x, m):
    return ((x + m - 1) // m) * m


def _gelu_f32(gate, approximate):
    if approximate:
        # tanh approximation -> transcendental goes to the EUP slot.
        inner = jnp.float32(_SQRT_2_OVER_PI) * (
            gate + jnp.float32(0.044715) * gate * gate * gate)
        return jnp.float32(0.5) * gate * (1.0 + jnp.tanh(inner))
    # Exact erf GELU (torch.nn.functional.gelu default).
    return jnp.float32(0.5) * gate * (1.0 + jax.lax.erf(gate * jnp.float32(_INV_SQRT_2)))


def _geglu_kernel_single_k(x_ref, w_ref, b_ref, o_ref, *, dim_out_p, approximate):
    # k_tiles == 1 fast path: one fused matmul over N = 2*dim_out_p, no VMEM
    # accumulator round trip.
    h = jnp.dot(x_ref[...], w_ref[...], preferred_element_type=jnp.float32)
    h = h + b_ref[...]
    x_half = h[:, :dim_out_p]
    gate = h[:, dim_out_p:]
    o_ref[...] = (x_half * _gelu_f32(gate, approximate)).astype(o_ref.dtype)


def _geglu_kernel_multi_k(x_ref, w_ref, b_ref, o_ref, acc_ref, *, dim_out_p, approximate):
    k = pl.program_id(1)

    @pl.when(k == 0)
    def _init():
        acc_ref[...] = jnp.zeros_like(acc_ref)

    acc_ref[...] += jnp.dot(x_ref[...], w_ref[...],
                            preferred_element_type=jnp.float32)

    @pl.when(k == pl.num_programs(1) - 1)
    def _finalize():
        h = acc_ref[...] + b_ref[...]
        x_half = h[:, :dim_out_p]
        gate = h[:, dim_out_p:]
        o_ref[...] = (x_half * _gelu_f32(gate, approximate)).astype(o_ref.dtype)


def geglu(x, w, b, *, tile_m=None, tile_k=None, compute_dtype=None, approximate=False):
    """GEGLU: h = x @ w + b; out = h[..., :d] * gelu(h[..., d:]).

    x: (..., dim_in), w: (dim_in, 2*dim_out)  (transposed vs nn.Linear's (out,in)),
    b: (2*dim_out,).  Returns (..., dim_out).
    """
    orig_shape = x.shape
    dim_in = orig_shape[-1]
    dim_out = w.shape[1] // 2
    out_dtype = x.dtype

    # --- compute dtype: bf16/f16 inputs use the MXU-native fast path; f32
    #     inputs default to f32 (exact torch parity) unless overridden.
    x_dt = jnp.dtype(x.dtype)
    if compute_dtype is None:
        if jnp.issubdtype(x_dt, jnp.floating) and x_dt.itemsize <= 2:
            compute_dtype = x_dt
        else:
            compute_dtype = jnp.float32
    x = x.astype(compute_dtype)
    w = w.astype(compute_dtype)
    x_isz = jnp.dtype(compute_dtype).itemsize
    o_isz = jnp.dtype(out_dtype).itemsize

    # --- host-side split, lane-dense padding of each half, then fuse back ----
    dim_out_p = _round_up(dim_out, 128)
    pad_n = dim_out_p - dim_out
    w_x = w[:, :dim_out]
    w_g = w[:, dim_out:]
    b_x = b[:dim_out].astype(jnp.float32)
    b_g = b[dim_out:].astype(jnp.float32)
    if pad_n:
        w_x = jnp.pad(w_x, ((0, 0), (0, pad_n)))
        w_g = jnp.pad(w_g, ((0, 0), (0, pad_n)))
        b_x = jnp.pad(b_x, (0, pad_n))
        b_g = jnp.pad(b_g, (0, pad_n))
    w_fused = jnp.concatenate([w_x, w_g], axis=1)                 # (dim_in, 2*dim_out_p)
    b_fused = jnp.concatenate([b_x, b_g]).reshape(1, 2 * dim_out_p)

    x2d = x.reshape(-1, dim_in)
    M = x2d.shape[0]

    # --- initial tile choices ------------------------------------------------
    if tile_m is None:
        # >= 2 m tiles when M allows, so the parallel axis shards across
        # v7x's two TensorCores; larger cap when K must be tiled (fewer
        # weight re-streams on v5e/v6e).
        cap_m = 1024 if dim_in > 2048 else 512
        tile_m = min(cap_m, _round_up(max(1, -(-M // 2)), 16))
    tile_m = max(16, _round_up(int(tile_m), 16))

    if tile_k is None:
        tile_k = dim_in if dim_in <= 2048 else 512
    tile_k = int(tile_k)

    # --- generation-aware VMEM budget ----------------------------------------
    try:
        vmem_cap = int(pltpu.get_tpu_info().vmem_capacity_bytes)
    except Exception:
        vmem_cap = 64 << 20   # conservative: v7x per-TC VMEM
    budget = (vmem_cap * 3) // 4

    def _footprint(tm, tk):
        if tk >= dim_in:
            tk_eff, ktiles = dim_in, 1
        else:
            tk_eff = max(128, _round_up(tk, 128))
            ktiles = _round_up(dim_in, tk_eff) // tk_eff
        f = 2 * tm * tk_eff * x_isz                     # x block (double buffered)
        f += 2 * tk_eff * 2 * dim_out_p * x_isz         # fused weight block
        f += 2 * 2 * dim_out_p * 4                      # fused bias block
        f += 2 * tm * dim_out_p * o_isz                 # output block
        if ktiles > 1:
            f += tm * 2 * dim_out_p * 4                 # f32 accumulator scratch
        return f

    while _footprint(tile_m, tile_k) > budget and (tile_m > 16 or tile_k > 128):
        if tile_k > 128 and (tile_k >= tile_m or tile_m <= 16):
            tile_k = max(128, _round_up(tile_k // 2, 128))
        elif tile_m > 16:
            tile_m = max(16, _round_up(tile_m // 2, 16))
        else:
            break

    # --- finalize K tiling / padding -----------------------------------------
    if tile_k >= dim_in:
        tile_k = dim_in
        K_p = dim_in
    else:
        tile_k = max(128, _round_up(tile_k, 128))       # lane-aligned K tiles
        K_p = _round_up(dim_in, tile_k)
    k_tiles = K_p // tile_k

    # --- finalize M padding ---------------------------------------------------
    M_p = _round_up(M, tile_m)
    m_tiles = M_p // tile_m
    if M_p != M:
        x2d = jnp.pad(x2d, ((0, M_p - M), (0, 0)))
    if K_p != dim_in:
        x2d = jnp.pad(x2d, ((0, 0), (0, K_p - dim_in)))
        w_fused = jnp.pad(w_fused, ((0, K_p - dim_in), (0, 0)))

    needed = _footprint(tile_m, tile_k)
    vmem_limit = int(min(vmem_cap, max(needed + (8 << 20), 32 << 20)))

    w_bytes = w_fused.size * x_isz
    cost = pl.CostEstimate(
        flops=int(2 * M_p * K_p * 2 * dim_out_p),
        transcendentals=int(M_p * dim_out_p),
        bytes_accessed=int(x2d.size * x_isz
                           + w_bytes * (m_tiles if k_tiles > 1 else 1)
                           + b_fused.size * 4
                           + M_p * dim_out_p * o_isz),
    )

    out_shape = jax.ShapeDtypeStruct((M_p, dim_out_p), out_dtype)

    if k_tiles == 1:
        kernel = functools.partial(_geglu_kernel_single_k,
                                   dim_out_p=dim_out_p, approximate=approximate)
        grid_spec = pltpu.PrefetchScalarGridSpec(
            num_scalar_prefetch=0,
            grid=(m_tiles,),
            in_specs=[
                pl.BlockSpec((tile_m, K_p), lambda i: (i, 0)),
                pl.BlockSpec((K_p, 2 * dim_out_p), lambda i: (0, 0)),
                pl.BlockSpec((1, 2 * dim_out_p), lambda i: (0, 0)),
            ],
            out_specs=pl.BlockSpec((tile_m, dim_out_p), lambda i: (i, 0)),
            scratch_shapes=[],
        )
        dims = ("parallel",)
    else:
        kernel = functools.partial(_geglu_kernel_multi_k,
                                   dim_out_p=dim_out_p, approximate=approximate)
        grid_spec = pltpu.PrefetchScalarGridSpec(
            num_scalar_prefetch=0,
            grid=(m_tiles, k_tiles),
            in_specs=[
                pl.BlockSpec((tile_m, tile_k), lambda i, k: (i, k)),
                pl.BlockSpec((tile_k, 2 * dim_out_p), lambda i, k: (k, 0)),
                pl.BlockSpec((1, 2 * dim_out_p), lambda i, k: (0, 0)),
            ],
            out_specs=pl.BlockSpec((tile_m, dim_out_p), lambda i, k: (i, 0)),
            scratch_shapes=[pltpu.VMEM((tile_m, 2 * dim_out_p), jnp.float32)],
        )
        dims = ("parallel", "arbitrary")

    out2d = pl.pallas_call(
        kernel,
        out_shape=out_shape,
        grid_spec=grid_spec,
        compiler_params=pltpu.CompilerParams(
            dimension_semantics=dims,
            vmem_limit_bytes=vmem_limit,
        ),
        cost_estimate=cost,
    )(x2d, w_fused, b_fused)

    out2d = out2d[:M, :dim_out]
    return out2d.reshape(*orig_shape[:-1], dim_out)


def geglu_reference(x, w, b):
    h = jnp.dot(x.astype(jnp.float32), w.astype(jnp.float32)) + b.astype(jnp.float32)
    dim_out = w.shape[1] // 2
    x_half, gate = h[..., :dim_out], h[..., dim_out:]
    out = x_half * 0.5 * gate * (1.0 + jax.lax.erf(gate / jnp.sqrt(2.0)))
    return out


if __name__ == "__main__":
    # --- test 1: small shapes consistent with the module (exact f32 path) ----
    batch, seq, dim_in, dim_out = 2, 8, 32, 32
    key = jax.random.PRNGKey(0)
    kx, kw, kb = jax.random.split(key, 3)
    x = jax.random.normal(kx, (batch, seq, dim_in), dtype=jnp.float32)
    bound = 1.0 / math.sqrt(dim_in)
    w = jax.random.uniform(kw, (dim_in, 2 * dim_out), minval=-bound, maxval=bound,
                           dtype=jnp.float32)
    b = jax.random.uniform(kb, (2 * dim_out,), minval=-bound, maxval=bound,
                           dtype=jnp.float32)
    out = jax.block_until_ready(geglu(x, w, b))
    ref = geglu_reference(x, w, b).astype(jnp.float32)
    assert out.shape == (batch, seq, dim_out)
    assert jnp.allclose(out, ref, atol=1e-5, rtol=1e-5), "mismatch vs reference (small)"

    # --- test 2: ragged M + non-128 features + multi-k accumulator path ------
    b2_, s2_, di2_, do2_ = 3, 100, 192, 96
    k2x, k2w, k2b = jax.random.split(jax.random.PRNGKey(1), 3)
    x2 = jax.random.normal(k2x, (b2_, s2_, di2_), dtype=jnp.float32)
    bound2 = 1.0 / math.sqrt(di2_)
    w2 = jax.random.uniform(k2w, (di2_, 2 * do2_), minval=-bound2, maxval=bound2,
                            dtype=jnp.float32)
    b2 = jax.random.uniform(k2b, (2 * do2_,), minval=-bound2, maxval=bound2,
                            dtype=jnp.float32)
    out2 = jax.block_until_ready(geglu(x2, w2, b2, tile_m=128, tile_k=128))
    ref2 = geglu_reference(x2, w2, b2).astype(jnp.float32)
    assert out2.shape == (b2_, s2_, do2_)
    assert jnp.allclose(out2, ref2, atol=1e-4, rtol=1e-4), "mismatch vs reference (tiled)"

    # --- test 3: bf16 fast path (bf16 MXU operands, f32 accumulate) ----------
    b3_, s3_, di3_, do3_ = 2, 64, 256, 128
    k3x, k3w, k3b = jax.random.split(jax.random.PRNGKey(2), 3)
    x3 = jax.random.normal(k3x, (b3_, s3_, di3_), dtype=jnp.float32).astype(jnp.bfloat16)
    bound3 = 1.0 / math.sqrt(di3_)
    w3 = jax.random.uniform(k3w, (di3_, 2 * do3_), minval=-bound3, maxval=bound3,
                            dtype=jnp.float32)
    b3 = jax.random.uniform(k3b, (2 * do3_,), minval=-bound3, maxval=bound3,
                            dtype=jnp.float32)
    out3 = jax.block_until_ready(geglu(x3, w3, b3))
    ref3 = geglu_reference(x3.astype(jnp.float32), w3, b3)
    assert out3.shape == (b3_, s3_, do3_)
    assert out3.dtype == jnp.bfloat16
    assert jnp.allclose(out3.astype(jnp.float32), ref3, atol=3e-2, rtol=3e-2), \
        "mismatch vs reference (bf16)"

    print("KERNEL_OK")
</pallas_src>

<mosaic_0001>
module attributes {stable_mosaic.version = 11 : i64} {
  func.func @_geglu_kernel_single_k(%arg0: i32, %arg1: memref<16x32xf32, #tpu.memory_space<vmem>>, %arg2: memref<32x256xf32, #tpu.memory_space<vmem>>, %arg3: memref<1x256xf32, #tpu.memory_space<vmem>>, %arg4: memref<16x128xf32, #tpu.memory_space<vmem>>) attributes {dimension_semantics = [#tpu.dimension_semantics<parallel>], iteration_bounds = array<i64: 1>, scalar_prefetch = 0 : i64, scratch_operands = 0 : i64, tpu.core_type = #tpu.core_type<tc>, window_params = [{transform_indices = @transform_0, window_bounds = array<i64: 16, 32>}, {pipeline_mode = #tpu.pipeline_mode<synchronous>, transform_indices = @transform_1, window_bounds = array<i64: 32, 256>}, {pipeline_mode = #tpu.pipeline_mode<synchronous>, transform_indices = @transform_2, window_bounds = array<i64: 1, 256>}, {transform_indices = @transform_3, window_bounds = array<i64: 16, 128>}]} {
    %c0 = arith.constant 0 : index
    %c0_0 = arith.constant 0 : index
    %0 = vector.load %arg1[%c0, %c0_0] : memref<16x32xf32, #tpu.memory_space<vmem>>, vector<16x32xf32>
    %c0_1 = arith.constant 0 : index
    %c0_2 = arith.constant 0 : index
    %1 = vector.load %arg2[%c0_1, %c0_2] : memref<32x256xf32, #tpu.memory_space<vmem>>, vector<32x256xf32>
    %cst = arith.constant dense<0.000000e+00> : vector<16x256xf32>
    %2 = tpu.matmul %0, %1, %cst {dimension_numbers = #tpu.dot_dimension_numbers<[1], [0], [0], [1], [0, 0, 1, 1], [], []>} : vector<16x32xf32>, vector<32x256xf32>, vector<16x256xf32> -> vector<16x256xf32>
    %c0_3 = arith.constant 0 : index
    %c0_4 = arith.constant 0 : index
    %3 = vector.load %arg3[%c0_3, %c0_4] : memref<1x256xf32, #tpu.memory_space<vmem>>, vector<1x256xf32>
    %4 = vector.broadcast %3 : vector<1x256xf32> to vector<16x256xf32>
    %5 = arith.addf %2, %4 : vector<16x256xf32>
    %6 = vector.extract_strided_slice %5 {offsets = [0, 0], sizes = [16, 128], strides = [1, 1]} : vector<16x256xf32> to vector<16x128xf32>
    %7 = vector.extract_strided_slice %5 {offsets = [0, 128], sizes = [16, 128], strides = [1, 1]} : vector<16x256xf32> to vector<16x128xf32>
    %cst_5 = arith.constant 5.000000e-01 : f32
    %8 = vector.broadcast %cst_5 : f32 to vector<16x128xf32>
    %9 = arith.mulf %8, %7 : vector<16x128xf32>
    %cst_6 = arith.constant 0.707106769 : f32
    %10 = vector.broadcast %cst_6 : f32 to vector<16x128xf32>
    %11 = arith.mulf %7, %10 : vector<16x128xf32>
    %12 = math.erf %11 : vector<16x128xf32>
    %cst_7 = arith.constant 1.000000e+00 : f32
    %13 = vector.broadcast %cst_7 : f32 to vector<16x128xf32>
    %14 = arith.addf %13, %12 : vector<16x128xf32>
    %15 = arith.mulf %9, %14 : vector<16x128xf32>
    %16 = arith.mulf %6, %15 : vector<16x128xf32>
    %c0_8 = arith.constant 0 : index
    %c0_9 = arith.constant 0 : index
    %17 = vector.load %arg4[%c0_8, %c0_9] : memref<16x128xf32, #tpu.memory_space<vmem>>, vector<16x128xf32>
    tpu.vector_store %arg4[%c0_8, %c0_9], %16 {strides = array<i32>} : memref<16x128xf32, #tpu.memory_space<vmem>>, vector<16x128xf32>,
    return
  }
  func.func @transform_0(%arg0: i32) -> (i32, i32) {
    %c0_i32 = arith.constant 0 : i32
    %c0_i32_0 = arith.constant 0 : i32
    return %arg0, %c0_i32 : i32, i32
  }
  func.func @transform_1(%arg0: i32) -> (i32, i32) {
    %c0_i32 = arith.constant 0 : i32
    %c0_i32_0 = arith.constant 0 : i32
    %c0_i32_1 = arith.constant 0 : i32
    return %c0_i32, %c0_i32_0 : i32, i32
  }
  func.func @transform_2(%arg0: i32) -> (i32, i32) {
    %c0_i32 = arith.constant 0 : i32
    %c0_i32_0 = arith.constant 0 : i32
    %c0_i32_1 = arith.constant 0 : i32
    return %c0_i32, %c0_i32_0 : i32, i32
  }
  func.func @transform_3(%arg0: i32) -> (i32, i32) {
    %c0_i32 = arith.constant 0 : i32
    %c0_i32_0 = arith.constant 0 : i32
    return %arg0, %c0_i32 : i32, i32
  }
}

</mosaic_0001>

<bundles_post_ra>
// kernel: tpu_custom_call.1
= control target key start
LH: loop header
LB: loop body
LE: loop exit
PB: predicated region body
PF: predicated region fallthrough
CT: control target
= control target key end

     0   :  { %8 = vsyncpa [#allocation3], 0  ;;  %s352_s0 = inlined_call_operand.hbm [shape: f32[16,32], index: 0, kind: input, shape index: {}]   ;;  %s353_s1 = inlined_call_operand.hbm [shape: f32[32,256], index: 1, kind: input, shape index: {}]   ;;  %s354_s2 = inlined_call_operand.vmem [shape: f32[1,256], index: 2, kind: input, shape index: {}]   ;;  %s355_s3 = inlined_call_operand.hbm [shape: f32[16,128], index: 3, kind: output, shape index: {}]  }
   0x1   :  { %9 = vsyncpa [#allocation6], 0 }
   0x2   :  { %10 = vsyncpa [#allocation4], 0  ;;  %s279_s12 = smov [#allocation2]   ;;  %s207_s16 = scalar_lea.hbm %s352_s0, 256 }
   0x3   :  { %s16_s13 = sshll.u32 %s279_s12, 4  ;;  %p208_p0 = scmp.ne.s32.totalorder %s352_s0, %s207_s16  ;;  %s17_s13 = int_to_ptr.vmem [resolvable:$true] %s16_s13 }
   0x4   :  { %p211_p1 = scmp.lt.u32.totalorder %s207_s16, %s352_s0 }
   0x6   :  { %p213_p2 = pnand %p211_p1, %p208_p0 }
   0x8   :  { %216 = shalt.err (!%p213_p2)
}
   0x9   :  { %s217_s21 = scalar_lea.vmem %s17_s13, 256  ;;  %p222_p4 = scmp.lt.s32.totalorder %s17_s13, %s17_s13 }
   0xa   :  { %p218_p3 = scmp.ne.s32.totalorder %s17_s13, %s217_s21  ;;  %p223_p5 = scmp.lt.s32.totalorder %s217_s21, %s217_s21 }
   0xc   :  { %p224_p6 = por %p223_p5, %p222_p4 }
   0xe   :  { %p225_p7 = pnand %p224_p6, %p218_p3 }
  0x10   :  { %228 = shalt.err (!%p225_p7)
}
  0x11   :  { %s280_s22 = smov 128   ;;  %s281_s23 = smov 8  }
  0x12   :  { %22 = dma.hbm_to_vmem [thread:$0]  %s352_s0, 256, %s17_s13, [#allocation3], %s280_s22, %s280_s22, %s281_s23  }
  0x13   :  { %s282_s26 = smov [#allocation5]   ;;  %s229_s30 = scalar_lea.hbm %s353_s1, 1024 }
  0x14   :  { %s28_s27 = sshll.u32 %s282_s26, 4  ;;  %p230_p8 = scmp.ne.s32.totalorder %s353_s1, %s229_s30  ;;  %s29_s27 = int_to_ptr.vmem [resolvable:$true] %s28_s27 }
  0x15   :  { %p233_p9 = scmp.lt.u32.totalorder %s229_s30, %s353_s1 }
  0x17   :  { %p235_p10 = pnand %p233_p9, %p230_p8 }
  0x19   :  { %238 = shalt.err (!%p235_p10)
}
  0x1a   :  { %s239_s8 = scalar_lea.vmem %s29_s27, 1024  ;;  %p244_p12 = scmp.lt.s32.totalorder %s29_s27, %s29_s27 }
  0x1b   :  { %p240_p11 = scmp.ne.s32.totalorder %s29_s27, %s239_s8  ;;  %p245_p13 = scmp.lt.s32.totalorder %s239_s8, %s239_s8 }
  0x1d   :  { %p246_p0 = por %p245_p13, %p244_p12 }
  0x1f   :  { %p247_p1 = pnand %p246_p0, %p240_p11 }
  0x21   :  { %250 = shalt.err (!%p247_p1)
}
  0x22   :  { %s283_s0 = smov 256   ;;  %s284_s9 = smov 16  }
  0x23   :  { %34 = dma.hbm_to_vmem [thread:$0]  %s353_s1, 1024, %s29_s27, [#allocation6], %s283_s0, %s283_s0, %s284_s9  }
  0x24   :  { %273 = dma.done.wait [#allocation3], 256  }
  0x25   :  { %274 = vsyncadd [#allocation3], 4294967040 }
  0x26   :  { %275 = dma.done.wait [#allocation6], 1024  }
  0x27   :  { %276 = vsyncadd [#allocation6], 4294966272  ;;  %v285_v0 = vmov 0.0   ;;  %v46_v1 = vld [vmem:[#allocation5 + $0x8] sm:$0xff]  ;;  %v48_v2 = vld [vmem:[#allocation5 + $0x18] sm:$0xff]  ;;  %vm65_vm0 = vcmask 261120   ;;  %v55_v15 = vlaneseq }
  0x28   :  { %136 = vmatprep.mubr.f32.mxu0 %v285_v0  ;;  %142 = vmatprep.mubr.f32.mxu1 %v285_v0  ;;  %v45_v3 = vld [vmem:[#allocation5] sm:$0xff]  ;;  %v183_v4 = vpack.c.bf16 %v48_v2, %v46_v1  ;;  %v47_v5 = vld [vmem:[#allocation5 + $0x10] sm:$0xff]  ;;  %v50_v6 = vld [vmem:[#allocation5 + $0x28] sm:$0xff] }
  0x29   :  { %v52_v7 = vld [vmem:[#allocation5 + $0x38] sm:$0xff]  ;;  %v185_v8 = vpack.c.bf16 %v47_v5, %v45_v3  ;;  %v49_v10 = vld [vmem:[#allocation5 + $0x20] sm:$0xff]  ;;  %v51_v11 = vld [vmem:[#allocation5 + $0x30] sm:$0xff]  ;;  %v56_v16 = vshrl.u32 %v55_v15, 7 }
  0x2a   :  { %v187_v9 = vpack.c.bf16 %v52_v7, %v50_v6  ;;  %184 = vmatprep.subr.bf16.mxu0 %v183_v4  ;;  %191 = vmatprep.subr.bf16.mxu1 %v183_v4  ;;  %v189_v12 = vpack.c.bf16 %v51_v11, %v49_v10  ;;  %v43_v13 = vld [vmem:[#allocation2] sm:$0xff]  ;;  %v44_v14 = vld [vmem:[#allocation2 + $0x8] sm:$0xff] }
  0x2b   :  { %186 = vmatpush1.bf16.msra.mxu0 %v185_v8  ;;  %193 = vmatpush1.bf16.msra.mxu1 %v185_v8  ;;  %v61_v17 = vsub.s32 1, %v56_v16  ;;  %v53_v18 = vld [vmem:[%s354_s2] sm:$0x3]  ;;  %v57_v28 = vsub.s32 0, %v56_v16  ;;  %s286_s2 = smov [#allocation7]  }
  0x2c   :  { %188 = vmatprep.subr.bf16.mxu0 %v187_v9  ;;  %192 = vmatprep.subr.bf16.mxu1 %v187_v9  ;;  %s168_s13 = sshll.u32 %s286_s2, 4  ;;  %s169_s13 = int_to_ptr.vmem [resolvable:$true] %s168_s13 }
  0x2d   :  { %v62_v19 = vrot.slane %v53_v18, %v61_v17  ;;  %v58_v29 = vrot.slane %v53_v18, %v57_v28  ;;  %s251_s14 = scalar_lea.vmem %s169_s13, 256  ;;  %p256_p3 = scmp.lt.s32.totalorder %s169_s13, %s169_s13 }
  0x2e   :  { %p252_p2 = scmp.ne.s32.totalorder %s169_s13, %s251_s14  ;;  %p257_p4 = scmp.lt.s32.totalorder %s251_s14, %s251_s14 }
  0x2f   :  { %190 = vmatpush1.bf16.msra.mxu0 %v189_v12  ;;  %194 = vmatpush1.bf16.msra.mxu1 %v189_v12 }
  0x30   :  { %p258_p5 = por %p257_p4, %p256_p3 }
  0x32   :  { %181 = vmatmul.mubr.msk.f32.vlgmr.msra.gmra.mrb[0].mxu0 %vm65_vm0, %v43_v13  ;;  %182 = vmatmul.mubr.msk.f32.vlgmr.msra.gmra.mrb[0].mxu1 %vm65_vm0, %v44_v14  ;;  %p259_p6 = pnand %p258_p5, %p252_p2 }
 0x105   :  { %v138_v20 = vpop.f32.mrb[0].mxu0  ;;  %v144_v21 = vpop.f32.mrb[0].mxu1 }
 0x106   :  { %v140_v22 = vpop.f32.mrb[1].mxu0  ;;  %v146_v23 = vpop.f32.mrb[1].mxu1  ;;  %v139_v36 = vadd.f32 %v138_v20, %v58_v29  ;;  %v145_v38 = vadd.f32 %v144_v21, %v58_v29 }
 0x107   :  { %v141_v24 = vadd.f32 %v140_v22, %v62_v19  ;;  %v147_v25 = vadd.f32 %v146_v23, %v62_v19 }
 0x109   :  { %v151_v26 = vmul.f32 0.70710677, %v141_v24  ;;  %v152_v27 = vmul.f32 0.70710677, %v147_v25  ;;  %v149_v32 = vmul.f32 0.5, %v141_v24  ;;  %v150_v34 = vmul.f32 0.5, %v147_v25 }
 0x10b   :  { %203 = verf.f32 %v151_v26 }
 0x10c   :  { %205 = verf.f32 %v152_v27 }
 0x115   :  { %v204_v30 = vpop.eup %203 }
 0x116   :  { %v206_v31 = vpop.eup %205  ;;  %v155_v33 = vadd.f32 1.0, %v204_v30 }
 0x117   :  { %v156_v35 = vadd.f32 1.0, %v206_v31 }
 0x118   :  { %v157_v37 = vmul.f32 %v155_v33, %v149_v32 }
 0x119   :  { %v158_v39 = vmul.f32 %v156_v35, %v150_v34 }
 0x11a   :  { %v159_v40 = vmul.f32 %v157_v37, %v139_v36 }
 0x11b   :  { %v160_v41 = vmul.f32 %v158_v39, %v145_v38 }
 0x11c   :  { %161 = vst [vmem:[#allocation7] sm:$0xff] %v159_v40 }
 0x11d   :  { %162 = vst [vmem:[#allocation7 + $0x8] sm:$0xff] %v160_v41 }
 0x11e   :  { %262 = shalt.err (!%p259_p6)
}
 0x11f   :  { %s263_s17 = scalar_lea.hbm %s355_s3, 256 }
 0x120   :  { %p264_p7 = scmp.ne.s32.totalorder %s355_s3, %s263_s17  ;;  %p267_p8 = scmp.lt.u32.totalorder %s263_s17, %s355_s3 }
 0x122   :  { %p269_p9 = pnand %p267_p8, %p264_p7 }
 0x124   :  { %272 = shalt.err (!%p269_p9)
}
 0x125   :  { %174 = dma.vmem_to_hbm [thread:$0]  %s169_s13, 256, %s355_s3, [#allocation4], %s280_s22, %s280_s22, %s281_s23  }
 0x126   :  { %277 = dma.done.wait [#allocation4], 256  }
 0x127   :  { %278 = vsyncadd [#allocation4], 4294967040 }
 0x128   :  { %178 = vsyncpa [#allocation3], 1 }
 0x129   :  { %179 = vsyncpa [#allocation6], 1 }
 0x12a   :  { %180 = vsyncpa [#allocation4], 1 }

</bundles_post_ra>
